<compile_context>
chip_gen: v6e
topology: v6e:2x2x1
jax: 0.10.0
libtpu: 0.0.40
codegen_flags: <defaults>
</compile_context>

<pallas_src>
import math
import functools

import jax
import jax.numpy as jnp
from jax.experimental import pallas as pl
from jax.experimental.pallas import tpu as pltpu

# ---------------- module hyper-parameters (small, consistent with the module) --------------
D_MODEL = 32
N_LEVELS = 2
N_HEADS = 4
N_POINTS = 2
RATIO = 1.0
D_VALUE = int(D_MODEL * RATIO)
D_HEAD = D_VALUE // N_HEADS


def _device_kind():
    try:
        return jax.devices()[0].device_kind.lower()
    except Exception:
        return ""


_KIND = _device_kind()
# bf16-native VPU on v6e (Trillium) and v7x; v5e and older keep the gather path in f32.
_HAS_BF16_VPU = ("v6" in _KIND) or ("v7" in _KIND)
_SMALL_VMEM = "v7" in _KIND                        # v7x: 64 MiB VMEM per TensorCore
GATHER_DTYPE = jnp.bfloat16 if _HAS_BF16_VPU else jnp.float32
# Leave headroom for Mosaic internal scratch: 48 MiB on v7x (64 MiB/TC), 96 MiB otherwise.
_VMEM_LIMIT = (48 if _SMALL_VMEM else 96) * 1024 * 1024


# ---------------- tiled linear kernel -------------------------------------------------------
def _linear_kernel(x_ref, w_ref, b_ref, o_ref):
    # o = x @ w + b  for one M-tile (K and N kept whole: they are small here).
    o_ref[...] = (
        jnp.dot(x_ref[...], w_ref[...], preferred_element_type=jnp.float32) + b_ref[...]
    )


def linear(x2d, w, b, tile_m=4096):
    """x2d: (M, K)  w: (K, N)  b: (N,)  ->  (M, N) float32, tiled over M."""
    M, K = x2d.shape
    Nout = w.shape[1]
    tm = M if M <= tile_m else tile_m  # large tiles amortize the ~600-cycle per-step overhead
    # TODO(synk): Nout (32 / 48) < 128 lanes -> masked vst.msk stores; pad Nout to 128 (and
    # slice off) only if measurement shows it beats the ~2.7x extra bytes written.
    return pl.pallas_call(
        _linear_kernel,
        out_shape=jax.ShapeDtypeStruct((M, Nout), jnp.float32),
        grid=(pl.cdiv(M, tm),),
        in_specs=[
            pl.BlockSpec((tm, K), lambda i: (i, 0)),
            pl.BlockSpec((K, Nout), lambda i: (0, 0)),
            pl.BlockSpec((1, Nout), lambda i: (0, 0)),
        ],
        out_specs=pl.BlockSpec((tm, Nout), lambda i: (i, 0)),
        compiler_params=pltpu.CompilerParams(
            dimension_semantics=("parallel",),
            vmem_limit_bytes=_VMEM_LIMIT),
    )(x2d.astype(jnp.float32), w, b.reshape(1, Nout))


# ---------------- deformable-attention core kernel ------------------------------------------
def _deform_core_kernel(value_ref, loc_ref, logit_ref, opw_t_ref, opb_ref, out_ref, *,
                        level_geom, starts, gather_dtype):
    """One (batch, query-tile) grid step: all heads + fused (transposed) output projection.

    value_ref : (1, D_VALUE, Len_in_pad)  pre-transposed; per-level row-major (Hp*Wp) slabs,
                padded rows/cols hold zeros; level starts are multiples of 128.
    loc_ref   : (1, Tq, H*L*P*2)          normalized (x, y) sampling locations
    logit_ref : (1, Tq, H*L*P)            pre-softmax attention logits
    opw_t_ref : (D_MODEL, D_VALUE)        output projection weight, pre-transposed
    opb_ref   : (D_MODEL, 1)              output projection bias
    out_ref   : (1, D_MODEL, Tq)          transposed output block (lane-dense over queries)
    """
    locT = loc_ref[0].T          # (H*L*P*2, Tq)  small XLU transposes
    lgT = logit_ref[0].T         # (H*L*P,   Tq)
    tq = locT.shape[1]
    LP = N_LEVELS * N_POINTS
    zero = jnp.zeros((), gather_dtype)

    # iotas are head/point-independent: build once per grid step (JAX does not CSE iota).
    y_iotas = [jax.lax.broadcasted_iota(jnp.int32, (Hp, tq), 0) for (_, _, Hp, _) in level_geom]
    x_iotas = [jax.lax.broadcasted_iota(jnp.int32, (Wp, tq), 0) for (_, _, _, Wp) in level_geom]

    head_accs = []
    for h in range(N_HEADS):                                    # static unroll over heads
        # softmax over the flattened (level, point) axis for this head
        lg = lgT[h * LP:(h + 1) * LP, :]                        # (LP, Tq)
        m = jnp.max(lg, axis=0, keepdims=True)
        e = jnp.exp(lg - m)
        denom = jnp.sum(e, axis=0, keepdims=True)
        r = pl.reciprocal(denom, approx=True)                   # EUP estimate (free slot)
        r = r * (2.0 - denom * r)                               # one Newton step -> f32 exact
        attn = e * r                                            # (LP, Tq)

        acc = jnp.zeros((D_HEAD, tq), jnp.float32)              # out^T accumulator, head h
        for l, (Hs, Ws, Hp, Wp) in enumerate(level_geom):       # static unroll over levels
            start = starts[l]
            hw_pad = Hp * Wp
            # (D_HEAD, hw_pad): sublane head slice (x8) + 128-aligned lane level slice
            v_lT = value_ref[0, h * D_HEAD:(h + 1) * D_HEAD, start:start + hw_pad]
            y_iota, x_iota = y_iotas[l], x_iotas[l]

            s_t = None                                          # S^T built as (Hp, Wp, Tq)
            for p in range(N_POINTS):                           # static unroll over points
                c = ((h * N_LEVELS + l) * N_POINTS + p) * 2
                x = locT[c:c + 1, :] * float(Ws) - 0.5          # (1, Tq)
                y = locT[c + 1:c + 2, :] * float(Hs) - 0.5
                a = attn[l * N_POINTS + p:l * N_POINTS + p + 1, :]
                x0 = jnp.floor(x)
                y0 = jnp.floor(y)
                lx, ly = x - x0, y - y0
                x0i = x0.astype(jnp.int32)
                y0i = y0.astype(jnp.int32)
                # Separable bilinear one-hots: out-of-range corners either match no row or
                # hit a zero-padded value row, so no clip / validity mask on the big array.
                ohy = (jnp.where(y_iota == y0i, (1.0 - ly).astype(gather_dtype), zero)
                       + jnp.where(y_iota == (y0i + 1), ly.astype(gather_dtype), zero))
                ohx = (jnp.where(x_iota == x0i, ((1.0 - lx) * a).astype(gather_dtype), zero)
                       + jnp.where(x_iota == (x0i + 1), (lx * a).astype(gather_dtype), zero))
                contrib = ohy[:, None, :] * ohx[None, :, :]     # (Hp, Wp, Tq) outer product
                s_t = contrib if s_t is None else s_t + contrib
            # free-view reshape (Wp % 8 == 0); MXU: (D_HEAD, HW) @ (HW, Tq), lane dim = Tq
            acc = acc + jnp.dot(v_lT, s_t.reshape(hw_pad, tq),
                                preferred_element_type=jnp.float32)
        head_accs.append(acc)

    accT = jnp.concatenate(head_accs, axis=0)                   # (D_VALUE, Tq), head-major
    # fused output projection, transposed: out^T = W_o^T @ acc^T + b  (no XLU transpose,
    # MXU N dim = Tq, full-width output stores)
    outT = jnp.dot(opw_t_ref[...], accT, preferred_element_type=jnp.float32) + opb_ref[...]
    out_ref[0] = outT.astype(out_ref.dtype)


def _pick_query_tile(len_q_pad):
    # Tq is the lane axis of every big VPU op, the MXU N dim and the store width: keep it a
    # multiple of 128.  Cap at 128 on v7x (64 MiB VMEM/TC) to bound the (HW, Tq) temporaries.
    if (len_q_pad % 256 == 0) and not _SMALL_VMEM:
        return 256
    return 128


def deform_attention_core(value_t, loc, logits, op_w_t, op_b, level_geom, starts, tq):
    """value_t: (N, D_VALUE, Len_in_pad)  loc: (N, Lq_pad, H*L*P*2)  logits: (N, Lq_pad, H*L*P)."""
    N, d_value, len_in_pad = value_t.shape
    len_q_pad = loc.shape[1]
    c_loc = loc.shape[2]
    c_lg = logits.shape[2]
    kernel = functools.partial(_deform_core_kernel, level_geom=level_geom, starts=starts,
                               gather_dtype=GATHER_DTYPE)
    return pl.pallas_call(
        kernel,
        out_shape=jax.ShapeDtypeStruct((N, D_MODEL, len_q_pad), jnp.float32),
        grid=(N, len_q_pad // tq),
        in_specs=[
            # value block index depends only on the batch axis -> stays VMEM-resident across
            # the query-tile axis.  TODO(synk): on v7x, pipeline_mode=pl.Buffered(1) here
            # would drop the unused second buffer and halve the resident-value footprint.
            pl.BlockSpec((1, d_value, len_in_pad), lambda n, q: (n, 0, 0)),
            pl.BlockSpec((1, tq, c_loc), lambda n, q: (n, q, 0)),
            pl.BlockSpec((1, tq, c_lg), lambda n, q: (n, q, 0)),
            pl.BlockSpec((D_MODEL, d_value), lambda n, q: (0, 0)),
            pl.BlockSpec((D_MODEL, 1), lambda n, q: (0, 0)),
        ],
        out_specs=pl.BlockSpec((1, D_MODEL, tq), lambda n, q: (n, 0, q)),
        compiler_params=pltpu.CompilerParams(
            dimension_semantics=("parallel", "parallel"),   # q-tiles are fully independent
            vmem_limit_bytes=_VMEM_LIMIT),
    )(value_t, loc, logits, op_w_t, op_b.reshape(D_MODEL, 1))


# ---------------- parameter init (mirrors MSDeformAttn._reset_parameters) ------------------
def init_params(key):
    k_vp, k_op = jax.random.split(key, 2)

    thetas = jnp.arange(N_HEADS, dtype=jnp.float32) * (2.0 * math.pi / N_HEADS)
    grid_init = jnp.stack([jnp.cos(thetas), jnp.sin(thetas)], axis=-1)          # (H, 2)
    grid_init = grid_init / jnp.max(jnp.abs(grid_init), axis=-1, keepdims=True)
    grid_init = jnp.tile(grid_init[:, None, None, :], (1, N_LEVELS, N_POINTS, 1))
    point_scale = jnp.arange(1, N_POINTS + 1, dtype=jnp.float32)[None, None, :, None]
    grid_init = grid_init * point_scale                                         # (H, L, P, 2)

    def xavier(k, fan_in, fan_out):
        a = math.sqrt(6.0 / (fan_in + fan_out))
        return jax.random.uniform(k, (fan_in, fan_out), jnp.float32, -a, a)

    return dict(
        # weights stored as (in_features, out_features) — transposed vs. torch.nn.Linear
        so_w=jnp.zeros((D_MODEL, N_HEADS * N_LEVELS * N_POINTS * 2), jnp.float32),
        so_b=grid_init.reshape(-1),
        aw_w=jnp.zeros((D_MODEL, N_HEADS * N_LEVELS * N_POINTS), jnp.float32),
        aw_b=jnp.zeros((N_HEADS * N_LEVELS * N_POINTS,), jnp.float32),
        vp_w=xavier(k_vp, D_MODEL, D_VALUE),
        vp_b=jnp.zeros((D_VALUE,), jnp.float32),
        op_w=xavier(k_op, D_VALUE, D_MODEL),
        op_b=jnp.zeros((D_MODEL,), jnp.float32),
    )


# ---------------- full forward (glue in plain JAX, hot paths in Pallas) ---------------------
def ms_deform_attn_forward(params, query, reference_points, input_flatten,
                           input_spatial_shapes, input_level_start_index,
                           input_padding_mask=None):
    N, len_q, _ = query.shape
    _, len_in, _ = input_flatten.shape
    # spatial shapes / level starts are static configuration (the CUDA op consumes them as
    # host scalars) — they must be concrete here (int() would fail on traced values).
    shapes = tuple((int(h), int(w)) for h, w in input_spatial_shapes)
    starts = tuple(int(s) for s in input_level_start_index)
    assert sum(h * w for h, w in shapes) == len_in

    # ---- value projection (M-tiled Pallas matmul) ----
    value = linear(input_flatten.reshape(N * len_in, D_MODEL), params["vp_w"], params["vp_b"])
    value = value.reshape(N, len_in, D_VALUE)
    if input_padding_mask is not None:
        value = jnp.where(input_padding_mask[..., None], 0.0, value)

    # ---- per-level re-layout + one XLA pre-transpose of value ----
    # pad W -> multiple of 8 (free in-kernel (Hp,Wp,Tq)->(Hp*Wp,Tq) reshape) and H ->
    # multiple of 16 (every level slab length is a multiple of 128 -> 128-aligned lane
    # slices of the pre-transposed value).  Padded rows hold zeros, so samples landing on
    # them contribute nothing (equivalent to the reference's validity mask).
    level_geom, segs, starts_k = [], [], []
    off = 0
    for l, (Hs, Ws) in enumerate(shapes):
        Hp = -(-Hs // 16) * 16
        Wp = -(-Ws // 8) * 8
        level_geom.append((Hs, Ws, Hp, Wp))
        seg = value[:, starts[l]:starts[l] + Hs * Ws, :].reshape(N, Hs, Ws, D_VALUE)
        seg = jnp.pad(seg, ((0, 0), (0, Hp - Hs), (0, Wp - Ws), (0, 0)))
        segs.append(seg.reshape(N, Hp * Wp, D_VALUE))
        starts_k.append(off)
        off += Hp * Wp
    value_p = jnp.concatenate(segs, axis=1)                         # (N, Len_in_pad, D_VALUE)
    # single transpose: resident value block becomes lane-dense (last dim = Len_in_pad);
    # bf16 on v6e/v7x (halves VMEM + native bf16 MXU), f32 on v5e.
    value_t = jnp.transpose(value_p, (0, 2, 1)).astype(GATHER_DTYPE)

    # ---- fused sampling-offset + attention-logit projection (one matmul, one launch) ----
    q2d = query.reshape(N * len_q, D_MODEL)
    so_cols = N_HEADS * N_LEVELS * N_POINTS * 2
    fused_w = jnp.concatenate([params["so_w"], params["aw_w"]], axis=1)
    fused_b = jnp.concatenate([params["so_b"], params["aw_b"]], axis=0)
    fused = linear(q2d, fused_w, fused_b)
    offsets = fused[:, :so_cols].reshape(N, len_q, N_HEADS, N_LEVELS, N_POINTS, 2)
    logits = fused[:, so_cols:].reshape(N, len_q, N_HEADS * N_LEVELS * N_POINTS)

    # ---- sampling locations (natural (N, Lq, H*L*P*2) layout: no XLA transposes) ----
    if reference_points.shape[-1] == 2:
        offset_normalizer = jnp.asarray([[w, h] for (h, w) in shapes], jnp.float32)  # (L, 2)
        sampling_locations = (reference_points[:, :, None, :, None, :]
                              + offsets / offset_normalizer[None, None, None, :, None, :])
    elif reference_points.shape[-1] == 4:
        sampling_locations = (reference_points[:, :, None, :, None, :2]
                              + offsets / N_POINTS
                              * reference_points[:, :, None, :, None, 2:] * 0.5)
    else:
        raise ValueError("Last dim of reference_points must be 2 or 4.")
    loc = sampling_locations.reshape(N, len_q, N_HEADS * N_LEVELS * N_POINTS * 2)

    # ---- pad the query axis to a multiple of 128 (full lane-width tiles everywhere) ----
    len_q_pad = -(-len_q // 128) * 128
    if len_q_pad != len_q:
        pad = ((0, 0), (0, len_q_pad - len_q), (0, 0))
        loc = jnp.pad(loc, pad)
        logits = jnp.pad(logits, pad)
    tq = _pick_query_tile(len_q_pad)

    # ---- deformable-attention core with fused (transposed) output projection ----
    out_t = deform_attention_core(value_t, loc, logits, params["op_w"].T, params["op_b"],
                                  tuple(level_geom), tuple(starts_k), tq)
    # (N, D_MODEL, Lq_pad) -> (N, Lq, D_MODEL): one tiny XLA transpose + drop query padding
    return jnp.transpose(out_t, (0, 2, 1))[:, :len_q, :]


# ---------------- pure-JAX reference for verification ---------------------------------------
def reference_forward(params, query, reference_points, input_flatten, shapes, starts):
    N, Lq, _ = query.shape
    _, Len_in, _ = input_flatten.shape
    value = (input_flatten @ params["vp_w"] + params["vp_b"]).reshape(N, Len_in, N_HEADS, D_HEAD)
    offs = (query @ params["so_w"] + params["so_b"]).reshape(N, Lq, N_HEADS, N_LEVELS, N_POINTS, 2)
    aw = (query @ params["aw_w"] + params["aw_b"]).reshape(N, Lq, N_HEADS, N_LEVELS * N_POINTS)
    aw = jax.nn.softmax(aw, -1).reshape(N, Lq, N_HEADS, N_LEVELS, N_POINTS)
    norm = jnp.asarray([[w, h] for (h, w) in shapes], jnp.float32)
    loc = reference_points[:, :, None, :, None, :] + offs / norm[None, None, None, :, None, :]

    out = jnp.zeros((N, Lq, N_HEADS, D_HEAD), jnp.float32)
    bidx = jnp.arange(N)[:, None, None]
    hidx = jnp.arange(N_HEADS)[None, None, :]
    for l, (Hl, Wl) in enumerate(shapes):
        v = value[:, starts[l]:starts[l] + Hl * Wl]                 # (N, HW, Hh, Dh)
        for p in range(N_POINTS):
            x = loc[:, :, :, l, p, 0] * Wl - 0.5
            y = loc[:, :, :, l, p, 1] * Hl - 0.5
            x0 = jnp.floor(x); y0 = jnp.floor(y)
            lx = x - x0; ly = y - y0
            x0i = x0.astype(jnp.int32); y0i = y0.astype(jnp.int32)
            samp = jnp.zeros((N, Lq, N_HEADS, D_HEAD), jnp.float32)
            for dy in (0, 1):
                for dx in (0, 1):
                    xi = x0i + dx; yi = y0i + dy
                    wgt = (lx if dx else 1 - lx) * (ly if dy else 1 - ly)
                    valid = ((xi >= 0) & (xi < Wl) & (yi >= 0) & (yi < Hl)).astype(jnp.float32)
                    flat = jnp.clip(yi, 0, Hl - 1) * Wl + jnp.clip(xi, 0, Wl - 1)
                    g = v[bidx, flat, hidx, :]                       # (N, Lq, Hh, Dh)
                    samp = samp + (wgt * valid)[..., None] * g
            out = out + aw[:, :, :, l, p, None] * samp
    return (out.reshape(N, Lq, D_VALUE) @ params["op_w"] + params["op_b"]).reshape(N, Lq, D_MODEL)


# ---------------- main -----------------------------------------------------------------------
if __name__ == "__main__":
    key = jax.random.PRNGKey(0)
    k_params, k_q, k_ref, k_val = jax.random.split(key, 4)

    params = init_params(k_params)

    N, Len_q = 2, 8
    shapes = ((8, 8), (4, 4))
    Len_in = sum(h * w for h, w in shapes)                 # 80
    spatial_shapes = jnp.asarray(shapes, jnp.int32)        # (n_levels, 2)
    level_start_index = jnp.asarray((0, shapes[0][0] * shapes[0][1]), jnp.int32)

    query = jax.random.normal(k_q, (N, Len_q, D_MODEL), jnp.float32)
    reference_points = jax.random.uniform(k_ref, (N, Len_q, N_LEVELS, 2), jnp.float32)
    input_flatten = jax.random.normal(k_val, (N, Len_in, D_MODEL), jnp.float32)

    out = ms_deform_attn_forward(params, query, reference_points, input_flatten,
                                 spatial_shapes, level_start_index,
                                 input_padding_mask=None)
    out = jax.block_until_ready(out)
    assert out.shape == (N, Len_q, D_MODEL)

    ref = reference_forward(params, query, reference_points, input_flatten,
                            shapes, tuple(int(s) for s in level_start_index))
    # bf16 gather path (v6e/v7x) keeps f32 accumulation but quantizes value + sampling
    # weights -> use a correspondingly looser (still bug-catching) tolerance.
    tol = 2e-2 if GATHER_DTYPE == jnp.bfloat16 else 2e-3
    assert jnp.allclose(out, ref, atol=tol, rtol=tol), "Pallas output mismatch vs JAX reference"

    print("KERNEL_OK")
</pallas_src>

<mosaic_0001>
module attributes {stable_mosaic.version = 11 : i64} {
  func.func @_linear_kernel(%arg0: i32, %arg1: memref<160x32xf32, #tpu.memory_space<vmem>>, %arg2: memref<32x32xf32, #tpu.memory_space<vmem>>, %arg3: memref<1x32xf32, #tpu.memory_space<vmem>>, %arg4: memref<160x32xf32, #tpu.memory_space<vmem>>) attributes {dimension_semantics = [#tpu.dimension_semantics<parallel>], iteration_bounds = array<i64: 1>, scalar_prefetch = 0 : i64, scratch_operands = 0 : i64, tpu.core_type = #tpu.core_type<tc>, window_params = [{transform_indices = @transform_0, window_bounds = array<i64: 160, 32>}, {pipeline_mode = #tpu.pipeline_mode<synchronous>, transform_indices = @transform_1, window_bounds = array<i64: 32, 32>}, {pipeline_mode = #tpu.pipeline_mode<synchronous>, transform_indices = @transform_2, window_bounds = array<i64: 1, 32>}, {transform_indices = @transform_3, window_bounds = array<i64: 160, 32>}]} {
    %c0 = arith.constant 0 : index
    %c0_0 = arith.constant 0 : index
    %0 = vector.load %arg1[%c0, %c0_0] : memref<160x32xf32, #tpu.memory_space<vmem>>, vector<160x32xf32>
    %c0_1 = arith.constant 0 : index
    %c0_2 = arith.constant 0 : index
    %1 = vector.load %arg2[%c0_1, %c0_2] : memref<32x32xf32, #tpu.memory_space<vmem>>, vector<32x32xf32>
    %cst = arith.constant dense<0.000000e+00> : vector<160x32xf32>
    %2 = tpu.matmul %0, %1, %cst {dimension_numbers = #tpu.dot_dimension_numbers<[1], [0], [0], [1], [0, 0, 1, 1], [], []>} : vector<160x32xf32>, vector<32x32xf32>, vector<160x32xf32> -> vector<160x32xf32>
    %c0_3 = arith.constant 0 : index
    %c0_4 = arith.constant 0 : index
    %3 = vector.load %arg3[%c0_3, %c0_4] : memref<1x32xf32, #tpu.memory_space<vmem>>, vector<1x32xf32>
    %4 = vector.broadcast %3 : vector<1x32xf32> to vector<160x32xf32>
    %5 = arith.addf %2, %4 : vector<160x32xf32>
    %c0_5 = arith.constant 0 : index
    %c0_6 = arith.constant 0 : index
    %6 = vector.load %arg4[%c0_5, %c0_6] : memref<160x32xf32, #tpu.memory_space<vmem>>, vector<160x32xf32>
    tpu.vector_store %arg4[%c0_5, %c0_6], %5 {strides = array<i32>} : memref<160x32xf32, #tpu.memory_space<vmem>>, vector<160x32xf32>,
    return
  }
  func.func @transform_0(%arg0: i32) -> (i32, i32) {
    %c0_i32 = arith.constant 0 : i32
    %c0_i32_0 = arith.constant 0 : i32
    return %arg0, %c0_i32 : i32, i32
  }
  func.func @transform_1(%arg0: i32) -> (i32, i32) {
    %c0_i32 = arith.constant 0 : i32
    %c0_i32_0 = arith.constant 0 : i32
    %c0_i32_1 = arith.constant 0 : i32
    return %c0_i32, %c0_i32_0 : i32, i32
  }
  func.func @transform_2(%arg0: i32) -> (i32, i32) {
    %c0_i32 = arith.constant 0 : i32
    %c0_i32_0 = arith.constant 0 : i32
    %c0_i32_1 = arith.constant 0 : i32
    return %c0_i32, %c0_i32_0 : i32, i32
  }
  func.func @transform_3(%arg0: i32) -> (i32, i32) {
    %c0_i32 = arith.constant 0 : i32
    %c0_i32_0 = arith.constant 0 : i32
    return %arg0, %c0_i32 : i32, i32
  }
}

</mosaic_0001>

<bundles_post_ra>
// kernel: tpu_custom_call.1
= control target key start
LH: loop header
LB: loop body
LE: loop exit
PB: predicated region body
PF: predicated region fallthrough
CT: control target
= control target key end

     0   :  { %vm45_vm0 = vcmask 261120   ;;  %s581_s1 = inlined_call_operand.vmem [shape: f32[32,32], index: 1, kind: input, shape index: {}]   ;;  %s582_s0 = inlined_call_operand.vmem [shape: f32[160,32], index: 0, kind: input, shape index: {}]   ;;  %s583_s2 = inlined_call_operand.vmem [shape: f32[1,32], index: 2, kind: input, shape index: {}]   ;;  %s584_s3 = inlined_call_operand.vmem [shape: f32[160,32], index: 3, kind: output, shape index: {}]  }
   0x1   :  { %v37_v0 = vld [vmem:[%s581_s1 + $0x18] sm:$0xff]  ;;  %v36_v1 = vld [vmem:[%s581_s1 + $0x10] sm:$0xff]  ;;  %v35_v2 = vld [vmem:[%s581_s1 + $0x8] sm:$0xff] }
   0x2   :  { %340 = vmatprep.subr.mxu0 %v37_v0  ;;  %378 = vmatprep.subr.mxu1 %v37_v0  ;;  %v34_v3 = vld [vmem:[%s581_s1] sm:$0xff]  ;;  %v24_v5 = vld [vmem:[%s582_s0 + $0x50] sm:$0xff]  ;;  %v15_v6 = vld [vmem:[%s582_s0 + $0x8] sm:$0xff] }
   0x3   :  { %341 = vmatpush3.msra.mxu0 %v37_v0  ;;  %382 = vmatpush3.msra.mxu1 %v37_v0  ;;  %v14_v4 = vld [vmem:[%s582_s0] sm:$0xff]  ;;  %v25_v7 = vld [vmem:[%s582_s0 + $0x58] sm:$0xff]  ;;  %v16_v8 = vld [vmem:[%s582_s0 + $0x10] sm:$0xff] }
   0x4   :  { %342 = vmatprep.subr.mxu0 %v36_v1  ;;  %379 = vmatprep.subr.mxu1 %v36_v1  ;;  %v26_v9 = vld [vmem:[%s582_s0 + $0x60] sm:$0xff]  ;;  %v17_v10 = vld [vmem:[%s582_s0 + $0x18] sm:$0xff]  ;;  %v27_v11 = vld [vmem:[%s582_s0 + $0x68] sm:$0xff] }
   0x5   :  { %343 = vmatpush3.msra.mxu0 %v36_v1  ;;  %383 = vmatpush3.msra.mxu1 %v36_v1  ;;  %v18_v12 = vld [vmem:[%s582_s0 + $0x20] sm:$0xff]  ;;  %v28_v13 = vld [vmem:[%s582_s0 + $0x70] sm:$0xff]  ;;  %v19_v14 = vld [vmem:[%s582_s0 + $0x28] sm:$0xff] }
   0x6   :  { %344 = vmatprep.subr.mxu0 %v35_v2  ;;  %380 = vmatprep.subr.mxu1 %v35_v2  ;;  %v29_v15 = vld [vmem:[%s582_s0 + $0x78] sm:$0xff]  ;;  %v20_v16 = vld [vmem:[%s582_s0 + $0x30] sm:$0xff]  ;;  %v30_v17 = vld [vmem:[%s582_s0 + $0x80] sm:$0xff] }
   0x7   :  { %345 = vmatpush3.msra.mxu0 %v35_v2  ;;  %384 = vmatpush3.msra.mxu1 %v35_v2  ;;  %v21_v18 = vld [vmem:[%s582_s0 + $0x38] sm:$0xff]  ;;  %v31_v19 = vld [vmem:[%s582_s0 + $0x88] sm:$0xff]  ;;  %v22_v20 = vld [vmem:[%s582_s0 + $0x40] sm:$0xff] }
   0x8   :  { %346 = vmatprep.subr.mxu0 %v34_v3  ;;  %381 = vmatprep.subr.mxu1 %v34_v3  ;;  %v32_v21 = vld [vmem:[%s582_s0 + $0x90] sm:$0xff]  ;;  %v23_v22 = vld [vmem:[%s582_s0 + $0x48] sm:$0xff]  ;;  %v33_v23 = vld [vmem:[%s582_s0 + $0x98] sm:$0xff] }
   0x9   :  { %347 = vmatpush3.msra.mxu0 %v34_v3  ;;  %385 = vmatpush3.msra.mxu1 %v34_v3  ;;  %v295_v24 = vld [vmem:[%s583_s2] ss:$0 sm:$0xff] }
   0xa   :  { %348 = vmatprep.mubr.msk.f32.mxu0 %vm45_vm0, %v14_v4  ;;  %363 = vmatprep.mubr.msk.f32.mxu1 %vm45_vm0, %v24_v5 }
   0xb   :  { %349 = vmatmul.mubr.msk.f32.vlgmr.msra.gmra.mxu0 %vm45_vm0, %v15_v6  ;;  %364 = vmatmul.mubr.msk.f32.vlgmr.msra.gmra.mxu1 %vm45_vm0, %v25_v7 }
   0xc   :  { %351 = vmatprep.mubr.msk.f32.mxu0 %vm45_vm0, %v16_v8  ;;  %366 = vmatprep.mubr.msk.f32.mxu1 %vm45_vm0, %v26_v9 }
   0xf   :  { %352 = vmatmul.mubr.msk.f32.gmra.mxu0 %vm45_vm0, %v17_v10  ;;  %367 = vmatmul.mubr.msk.f32.gmra.mxu1 %vm45_vm0, %v27_v11 }
  0x10   :  { %354 = vmatprep.mubr.msk.f32.mxu0 %vm45_vm0, %v18_v12  ;;  %369 = vmatprep.mubr.msk.f32.mxu1 %vm45_vm0, %v28_v13 }
  0x13   :  { %355 = vmatmul.mubr.msk.f32.gmra.mxu0 %vm45_vm0, %v19_v14  ;;  %370 = vmatmul.mubr.msk.f32.gmra.mxu1 %vm45_vm0, %v29_v15 }
  0x14   :  { %357 = vmatprep.mubr.msk.f32.mxu0 %vm45_vm0, %v20_v16  ;;  %372 = vmatprep.mubr.msk.f32.mxu1 %vm45_vm0, %v30_v17 }
  0x17   :  { %358 = vmatmul.mubr.msk.f32.gmra.mxu0 %vm45_vm0, %v21_v18  ;;  %373 = vmatmul.mubr.msk.f32.gmra.mxu1 %vm45_vm0, %v31_v19 }
  0x18   :  { %360 = vmatprep.mubr.msk.f32.mxu0 %vm45_vm0, %v22_v20  ;;  %375 = vmatprep.mubr.msk.f32.mxu1 %vm45_vm0, %v32_v21 }
  0x1b   :  { %361 = vmatmul.mubr.msk.f32.gmra.mxu0 %vm45_vm0, %v23_v22  ;;  %376 = vmatmul.mubr.msk.f32.gmra.mxu1 %vm45_vm0, %v33_v23 }
  0xcb   :  { %v350_v25 = vpop.f32.mrf.mxu0  ;;  %v365_v26 = vpop.f32.mrf.mxu1 }
  0xcc   :  { %v178_v27 = vadd.f32 %v350_v25, %v295_v24  ;;  %v228_v28 = vadd.f32 %v365_v26, %v295_v24 }
  0xcd   :  { %v172_v29 = vpop.f32.mrf.mxu0  ;;  %v222_v30 = vpop.f32.mrf.mxu1 }
  0xce   :  { %272 = vst.msk [vmem:[%s584_s3 + $0x8] sm:$0xff] %vm45_vm0, %v178_v27  ;;  %282 = vst.msk [vmem:[%s584_s3 + $0x58] sm:$0xff] %vm45_vm0, %v228_v28  ;;  %v173_v31 = vadd.f32 %v295_v24, %v172_v29  ;;  %v223_v32 = vadd.f32 %v295_v24, %v222_v30 }
  0xcf   :  { %v353_v33 = vpop.f32.mrf.mxu0  ;;  %v368_v34 = vpop.f32.mrf.mxu1 }
  0xd0   :  { %271 = vst.msk [vmem:[%s584_s3] sm:$0xff] %vm45_vm0, %v173_v31  ;;  %281 = vst.msk [vmem:[%s584_s3 + $0x50] sm:$0xff] %vm45_vm0, %v223_v32  ;;  %v188_v35 = vadd.f32 %v353_v33, %v295_v24  ;;  %v238_v36 = vadd.f32 %v368_v34, %v295_v24 }
  0xd1   :  { %v182_v37 = vpop.f32.mrf.mxu0  ;;  %v232_v38 = vpop.f32.mrf.mxu1 }
  0xd2   :  { %274 = vst.msk [vmem:[%s584_s3 + $0x18] sm:$0xff] %vm45_vm0, %v188_v35  ;;  %284 = vst.msk [vmem:[%s584_s3 + $0x68] sm:$0xff] %vm45_vm0, %v238_v36  ;;  %v183_v39 = vadd.f32 %v295_v24, %v182_v37  ;;  %v233_v40 = vadd.f32 %v295_v24, %v232_v38 }
  0xd3   :  { %v356_v41 = vpop.f32.mrf.mxu0  ;;  %v371_v42 = vpop.f32.mrf.mxu1 }
  0xd4   :  { %273 = vst.msk [vmem:[%s584_s3 + $0x10] sm:$0xff] %vm45_vm0, %v183_v39  ;;  %283 = vst.msk [vmem:[%s584_s3 + $0x60] sm:$0xff] %vm45_vm0, %v233_v40  ;;  %v198_v43 = vadd.f32 %v356_v41, %v295_v24  ;;  %v248_v44 = vadd.f32 %v371_v42, %v295_v24 }
  0xd5   :  { %v192_v45 = vpop.f32.mrf.mxu0  ;;  %v242_v46 = vpop.f32.mrf.mxu1 }
  0xd6   :  { %276 = vst.msk [vmem:[%s584_s3 + $0x28] sm:$0xff] %vm45_vm0, %v198_v43  ;;  %286 = vst.msk [vmem:[%s584_s3 + $0x78] sm:$0xff] %vm45_vm0, %v248_v44  ;;  %v193_v47 = vadd.f32 %v295_v24, %v192_v45  ;;  %v243_v48 = vadd.f32 %v295_v24, %v242_v46 }
  0xd7   :  { %v359_v49 = vpop.f32.mrf.mxu0  ;;  %v374_v50 = vpop.f32.mrf.mxu1 }
  0xd8   :  { %275 = vst.msk [vmem:[%s584_s3 + $0x20] sm:$0xff] %vm45_vm0, %v193_v47  ;;  %285 = vst.msk [vmem:[%s584_s3 + $0x70] sm:$0xff] %vm45_vm0, %v243_v48  ;;  %v208_v51 = vadd.f32 %v359_v49, %v295_v24  ;;  %v258_v52 = vadd.f32 %v374_v50, %v295_v24 }
  0xd9   :  { %v202_v53 = vpop.f32.mrf.mxu0  ;;  %v252_v54 = vpop.f32.mrf.mxu1 }
  0xda   :  { %278 = vst.msk [vmem:[%s584_s3 + $0x38] sm:$0xff] %vm45_vm0, %v208_v51  ;;  %288 = vst.msk [vmem:[%s584_s3 + $0x88] sm:$0xff] %vm45_vm0, %v258_v52  ;;  %v203_v55 = vadd.f32 %v295_v24, %v202_v53  ;;  %v253_v56 = vadd.f32 %v295_v24, %v252_v54 }
  0xdb   :  { %v362_v57 = vpop.f32.mrf.mxu0  ;;  %v377_v58 = vpop.f32.mrf.mxu1 }
  0xdc   :  { %277 = vst.msk [vmem:[%s584_s3 + $0x30] sm:$0xff] %vm45_vm0, %v203_v55  ;;  %287 = vst.msk [vmem:[%s584_s3 + $0x80] sm:$0xff] %vm45_vm0, %v253_v56  ;;  %v218_v59 = vadd.f32 %v362_v57, %v295_v24  ;;  %v268_v60 = vadd.f32 %v377_v58, %v295_v24 }
  0xdd   :  { %v212_v61 = vpop.f32.mrf.mxu0  ;;  %v262_v62 = vpop.f32.mrf.mxu1 }
  0xde   :  { %280 = vst.msk [vmem:[%s584_s3 + $0x48] sm:$0xff] %vm45_vm0, %v218_v59  ;;  %290 = vst.msk [vmem:[%s584_s3 + $0x98] sm:$0xff] %vm45_vm0, %v268_v60  ;;  %v213_v63 = vadd.f32 %v295_v24, %v212_v61  ;;  %v263_v0 = vadd.f32 %v295_v24, %v262_v62 }
  0xe0   :  { %279 = vst.msk [vmem:[%s584_s3 + $0x40] sm:$0xff] %vm45_vm0, %v213_v63  ;;  %289 = vst.msk [vmem:[%s584_s3 + $0x90] sm:$0xff] %vm45_vm0, %v263_v0 }

</bundles_post_ra>
